<compile_context>
chip_gen: v7x
topology: tpu7x:2x2x1
jax: 0.10.0
libtpu: 0.0.40
codegen_flags: <defaults>
</compile_context>

<pallas_src>
from functools import partial

import numpy as np
import jax
import jax.numpy as jnp
from jax import lax
from jax.experimental import pallas as pl
from jax.experimental.pallas import tpu as pltpu

# ---------------------------------------------------------------------------
# Problem sizes (consistent with the module's (D_in, H, D_out) ctor args)
# ---------------------------------------------------------------------------
N = 256        # batch (number of collocation points)
D_IN = 4
H = 32
D_OUT = 2
LANES = 128            # one vreg lane-tile
CHUNK = 2 * LANES      # batch chunk per grid step = two independent 128-lane streams


# ---------------------------------------------------------------------------
# One-time parameter packing (NOT in the per-call hot path)
# ---------------------------------------------------------------------------
def pack_params(params):
    """Pack the 10 Linear params into zero-padded slabs. Call once per update.

    w_slab: [5, H, H]  torch [out, in] layout; W1 padded in [:, :D_in],
            W5 padded in [:D_out, :].
    b_slab: [5, H, 1]  column biases (b5 padded in [:D_out]).
    """
    (w1, b1, w2, b2, w3, b3, w4, b4, w5, b5) = params
    h_dim = w2.shape[0]
    d_in = w1.shape[1]
    d_out = w5.shape[0]

    w_slab = np.zeros((5, h_dim, h_dim), np.float32)
    w_slab[0, :, :d_in] = np.asarray(w1, np.float32)
    w_slab[1] = np.asarray(w2, np.float32)
    w_slab[2] = np.asarray(w3, np.float32)
    w_slab[3] = np.asarray(w4, np.float32)
    w_slab[4, :d_out, :] = np.asarray(w5, np.float32)

    b_slab = np.zeros((5, h_dim, 1), np.float32)
    for i, b in enumerate((b1, b2, b3, b4, b5)):
        b = np.asarray(b, np.float32)
        b_slab[i, : b.shape[0], 0] = b

    return jnp.asarray(w_slab), jnp.asarray(b_slab)


# ---------------------------------------------------------------------------
# Pallas forward
# ---------------------------------------------------------------------------
@partial(jax.jit, static_argnames=("d_in", "d_out"))
def particular_forward(x, w_slab, b_slab, d_in=D_IN, d_out=D_OUT):
    """x: [N, D_in] f32, pre-packed slabs -> y: [N, D_out] f32."""
    n = x.shape[0]
    h_dim = w_slab.shape[1]

    nb = ((n + CHUNK - 1) // CHUNK) * CHUNK
    if nb != n:                                   # demo batch (256) needs no pad
        x = jnp.pad(x, ((0, nb - n), (0, 0)))
    n_chunks = nb // CHUNK

    def kernel(x_ref, w_ref, b_ref, o_ref):
        # Hoisted weight/bias loads (one load each, shared by both streams).
        w1 = w_ref[0][:, :d_in]                   # [H, D_in] static lane-slice
        ws = [w_ref[l] for l in range(1, 5)]      # [H, H] each
        bs = [b_ref[l] for l in range(5)]         # [H, 1] each

        def run(xh):                              # xh: [LANES, D_in] (batch-major)
            # Layer 1: W1 . xh^T via dot_general contracting last dims of both.
            z = lax.dot_general(
                w1, xh, (((1,), (1,)), ((), ())),
                preferred_element_type=jnp.float32) + bs[0]     # [H, LANES]
            hcur = jnp.tanh(z)
            for l in range(1, 4):                 # layers 2..4
                z = jnp.dot(ws[l - 1], hcur,
                            preferred_element_type=jnp.float32) + bs[l]
                hcur = jnp.tanh(z)
            z = jnp.dot(ws[3], hcur,              # layer 5 (rows >= d_out are zero)
                        preferred_element_type=jnp.float32) + bs[4]
            return z[:d_out, :]                   # [D_out, LANES]

        xc = x_ref[...]                           # [CHUNK, D_in]
        # Two independent 128-lane streams -> two independent dot->tanh chains.
        o_ref[:, :LANES] = run(xc[:LANES, :]).astype(o_ref.dtype)
        o_ref[:, LANES:] = run(xc[LANES:, :]).astype(o_ref.dtype)

    grid_spec = pltpu.PrefetchScalarGridSpec(
        num_scalar_prefetch=0,
        grid=(n_chunks,),                         # batch-chunk axis; weights stay resident
        in_specs=[
            pl.BlockSpec((CHUNK, d_in), lambda i: (i, 0)),
            pl.BlockSpec((5, h_dim, h_dim), lambda i: (0, 0, 0)),
            pl.BlockSpec((5, h_dim, 1), lambda i: (0, 0, 0)),
        ],
        out_specs=pl.BlockSpec((d_out, CHUNK), lambda i: (0, i)),
    )

    yt = pl.pallas_call(
        kernel,
        out_shape=jax.ShapeDtypeStruct((d_out, nb), jnp.float32),
        grid_spec=grid_spec,
        compiler_params=pltpu.CompilerParams(
            dimension_semantics=("parallel",),
            vmem_limit_bytes=4 * 1024 * 1024,     # total footprint is a few hundred KB
        ),
    )(x, w_slab, b_slab)

    if nb != n:
        yt = yt[:, :n]
    return yt.T                                   # single tiny [d_out, N] transpose


# ---------------------------------------------------------------------------
# Init + pure-JAX reference
# ---------------------------------------------------------------------------
def init_params(key):
    """Deterministic init matching the PyTorch module's normal_ initializers."""
    ks = jax.random.split(key, 10)

    def w(k, fan_out, fan_in, std):
        return (std * jax.random.normal(k, (fan_out, fan_in))).astype(jnp.float32)

    def b(k, fan_out):
        return jax.random.normal(k, (fan_out,)).astype(jnp.float32)

    w1 = w(ks[0], H, D_IN, np.sqrt(2.0 / (D_IN + H)))
    w2 = w(ks[1], H, H, np.sqrt(2.0 / (H + H)))
    w3 = w(ks[2], H, H, np.sqrt(2.0 / (H + H)))
    w4 = w(ks[3], H, H, np.sqrt(2.0 / (H + H)))
    w5 = w(ks[4], D_OUT, H, np.sqrt(2.0 / (H + D_OUT)))
    b1 = b(ks[5], H)
    b2 = b(ks[6], H)
    b3 = b(ks[7], H)
    b4 = b(ks[8], H)
    b5 = b(ks[9], D_OUT)
    return (w1, b1, w2, b2, w3, b3, w4, b4, w5, b5)


def reference_forward(x, params):
    """Pure-JAX reference replicating the PyTorch forward (n*a1 == 1)."""
    (w1, b1, w2, b2, w3, b3, w4, b4, w5, b5) = params
    y1 = jnp.tanh(x @ w1.T + b1)
    y2 = jnp.tanh(y1 @ w2.T + b2)
    y3 = jnp.tanh(y2 @ w3.T + b3)
    y4 = jnp.tanh(y3 @ w4.T + b4)
    return y4 @ w5.T + b5


if __name__ == "__main__":
    key = jax.random.PRNGKey(0)
    k_params, k_x = jax.random.split(key)

    params = init_params(k_params)
    x = jax.random.normal(k_x, (N, D_IN), dtype=jnp.float32)

    # One-time packing (outside the per-call hot path).
    w_slab, b_slab = pack_params(params)

    y = particular_forward(x, w_slab, b_slab)
    y = jax.block_until_ready(y)

    y_ref = reference_forward(x, params)
    np.testing.assert_allclose(np.asarray(y), np.asarray(y_ref),
                               rtol=1e-5, atol=1e-5)

    print("KERNEL_OK")
</pallas_src>

<mosaic_0001>
module attributes {stable_mosaic.version = 11 : i64} {
  func.func @kernel(%arg0: i32, %arg1: memref<256x4xf32, #tpu.memory_space<vmem>>, %arg2: memref<5x32x32xf32, #tpu.memory_space<vmem>>, %arg3: memref<5x32x1xf32, #tpu.memory_space<vmem>>, %arg4: memref<2x256xf32, #tpu.memory_space<vmem>>) attributes {dimension_semantics = [#tpu.dimension_semantics<parallel>], iteration_bounds = array<i64: 1>, scalar_prefetch = 0 : i64, scratch_operands = 0 : i64, tpu.core_type = #tpu.core_type<tc>, window_params = [{transform_indices = @transform_0, window_bounds = array<i64: 256, 4>}, {pipeline_mode = #tpu.pipeline_mode<synchronous>, transform_indices = @transform_1, window_bounds = array<i64: 5, 32, 32>}, {pipeline_mode = #tpu.pipeline_mode<synchronous>, transform_indices = @transform_2, window_bounds = array<i64: 5, 32, 1>}, {transform_indices = @transform_3, window_bounds = array<i64: 2, 256>}]} {
    %c0 = arith.constant 0 : index
    %c0_0 = arith.constant 0 : index
    %c0_1 = arith.constant 0 : index
    %0 = vector.load %arg2[%c0, %c0_0, %c0_1] : memref<5x32x32xf32, #tpu.memory_space<vmem>>, vector<1x32x32xf32>
    %1 = vector.shape_cast %0 : vector<1x32x32xf32> to vector<32x32xf32>
    %2 = vector.extract_strided_slice %1 {offsets = [0, 0], sizes = [32, 4], strides = [1, 1]} : vector<32x32xf32> to vector<32x4xf32>
    %c1 = arith.constant 1 : index
    %c0_2 = arith.constant 0 : index
    %c0_3 = arith.constant 0 : index
    %3 = vector.load %arg2[%c1, %c0_2, %c0_3] : memref<5x32x32xf32, #tpu.memory_space<vmem>>, vector<1x32x32xf32>
    %4 = vector.shape_cast %3 : vector<1x32x32xf32> to vector<32x32xf32>
    %c2 = arith.constant 2 : index
    %c0_4 = arith.constant 0 : index
    %c0_5 = arith.constant 0 : index
    %5 = vector.load %arg2[%c2, %c0_4, %c0_5] : memref<5x32x32xf32, #tpu.memory_space<vmem>>, vector<1x32x32xf32>
    %6 = vector.shape_cast %5 : vector<1x32x32xf32> to vector<32x32xf32>
    %c3 = arith.constant 3 : index
    %c0_6 = arith.constant 0 : index
    %c0_7 = arith.constant 0 : index
    %7 = vector.load %arg2[%c3, %c0_6, %c0_7] : memref<5x32x32xf32, #tpu.memory_space<vmem>>, vector<1x32x32xf32>
    %8 = vector.shape_cast %7 : vector<1x32x32xf32> to vector<32x32xf32>
    %c4 = arith.constant 4 : index
    %c0_8 = arith.constant 0 : index
    %c0_9 = arith.constant 0 : index
    %9 = vector.load %arg2[%c4, %c0_8, %c0_9] : memref<5x32x32xf32, #tpu.memory_space<vmem>>, vector<1x32x32xf32>
    %10 = vector.shape_cast %9 : vector<1x32x32xf32> to vector<32x32xf32>
    %c0_10 = arith.constant 0 : index
    %c0_11 = arith.constant 0 : index
    %c0_12 = arith.constant 0 : index
    %11 = vector.load %arg3[%c0_10, %c0_11, %c0_12] : memref<5x32x1xf32, #tpu.memory_space<vmem>>, vector<1x32x1xf32>
    %12 = vector.shape_cast %11 : vector<1x32x1xf32> to vector<32x1xf32>
    %c1_13 = arith.constant 1 : index
    %c0_14 = arith.constant 0 : index
    %c0_15 = arith.constant 0 : index
    %13 = vector.load %arg3[%c1_13, %c0_14, %c0_15] : memref<5x32x1xf32, #tpu.memory_space<vmem>>, vector<1x32x1xf32>
    %14 = vector.shape_cast %13 : vector<1x32x1xf32> to vector<32x1xf32>
    %c2_16 = arith.constant 2 : index
    %c0_17 = arith.constant 0 : index
    %c0_18 = arith.constant 0 : index
    %15 = vector.load %arg3[%c2_16, %c0_17, %c0_18] : memref<5x32x1xf32, #tpu.memory_space<vmem>>, vector<1x32x1xf32>
    %16 = vector.shape_cast %15 : vector<1x32x1xf32> to vector<32x1xf32>
    %c3_19 = arith.constant 3 : index
    %c0_20 = arith.constant 0 : index
    %c0_21 = arith.constant 0 : index
    %17 = vector.load %arg3[%c3_19, %c0_20, %c0_21] : memref<5x32x1xf32, #tpu.memory_space<vmem>>, vector<1x32x1xf32>
    %18 = vector.shape_cast %17 : vector<1x32x1xf32> to vector<32x1xf32>
    %c4_22 = arith.constant 4 : index
    %c0_23 = arith.constant 0 : index
    %c0_24 = arith.constant 0 : index
    %19 = vector.load %arg3[%c4_22, %c0_23, %c0_24] : memref<5x32x1xf32, #tpu.memory_space<vmem>>, vector<1x32x1xf32>
    %20 = vector.shape_cast %19 : vector<1x32x1xf32> to vector<32x1xf32>
    %c0_25 = arith.constant 0 : index
    %c0_26 = arith.constant 0 : index
    %21 = vector.load %arg1[%c0_25, %c0_26] : memref<256x4xf32, #tpu.memory_space<vmem>>, vector<256x4xf32>
    %22 = vector.extract_strided_slice %21 {offsets = [0, 0], sizes = [128, 4], strides = [1, 1]} : vector<256x4xf32> to vector<128x4xf32>
    %cst = arith.constant dense<0.000000e+00> : vector<32x128xf32>
    %23 = tpu.matmul %2, %22, %cst {dimension_numbers = #tpu.dot_dimension_numbers<[1], [1], [0], [0], [0, 0, 1, 0], [], []>} : vector<32x4xf32>, vector<128x4xf32>, vector<32x128xf32> -> vector<32x128xf32>
    %24 = vector.broadcast %12 : vector<32x1xf32> to vector<32x128xf32>
    %25 = arith.addf %23, %24 : vector<32x128xf32>
    %26 = math.tanh %25 : vector<32x128xf32>
    %cst_27 = arith.constant dense<0.000000e+00> : vector<32x128xf32>
    %27 = tpu.matmul %4, %26, %cst_27 {dimension_numbers = #tpu.dot_dimension_numbers<[1], [0], [0], [1], [0, 0, 1, 1], [], []>} : vector<32x32xf32>, vector<32x128xf32>, vector<32x128xf32> -> vector<32x128xf32>
    %28 = vector.broadcast %14 : vector<32x1xf32> to vector<32x128xf32>
    %29 = arith.addf %27, %28 : vector<32x128xf32>
    %30 = math.tanh %29 : vector<32x128xf32>
    %cst_28 = arith.constant dense<0.000000e+00> : vector<32x128xf32>
    %31 = tpu.matmul %6, %30, %cst_28 {dimension_numbers = #tpu.dot_dimension_numbers<[1], [0], [0], [1], [0, 0, 1, 1], [], []>} : vector<32x32xf32>, vector<32x128xf32>, vector<32x128xf32> -> vector<32x128xf32>
    %32 = vector.broadcast %16 : vector<32x1xf32> to vector<32x128xf32>
    %33 = arith.addf %31, %32 : vector<32x128xf32>
    %34 = math.tanh %33 : vector<32x128xf32>
    %cst_29 = arith.constant dense<0.000000e+00> : vector<32x128xf32>
    %35 = tpu.matmul %8, %34, %cst_29 {dimension_numbers = #tpu.dot_dimension_numbers<[1], [0], [0], [1], [0, 0, 1, 1], [], []>} : vector<32x32xf32>, vector<32x128xf32>, vector<32x128xf32> -> vector<32x128xf32>
    %36 = vector.broadcast %18 : vector<32x1xf32> to vector<32x128xf32>
    %37 = arith.addf %35, %36 : vector<32x128xf32>
    %38 = math.tanh %37 : vector<32x128xf32>
    %cst_30 = arith.constant dense<0.000000e+00> : vector<32x128xf32>
    %39 = tpu.matmul %10, %38, %cst_30 {dimension_numbers = #tpu.dot_dimension_numbers<[1], [0], [0], [1], [0, 0, 1, 1], [], []>} : vector<32x32xf32>, vector<32x128xf32>, vector<32x128xf32> -> vector<32x128xf32>
    %40 = vector.broadcast %20 : vector<32x1xf32> to vector<32x128xf32>
    %41 = arith.addf %39, %40 : vector<32x128xf32>
    %42 = vector.extract_strided_slice %41 {offsets = [0, 0], sizes = [2, 128], strides = [1, 1]} : vector<32x128xf32> to vector<2x128xf32>
    %c0_31 = arith.constant 0 : index
    %c0_32 = arith.constant 0 : index
    %43 = vector.load %arg4[%c0_31, %c0_32] : memref<2x256xf32, #tpu.memory_space<vmem>>, vector<2x128xf32>
    tpu.vector_store %arg4[%c0_31, %c0_32], %42 {strides = array<i32>} : memref<2x256xf32, #tpu.memory_space<vmem>>, vector<2x128xf32>,
    %44 = vector.extract_strided_slice %21 {offsets = [128, 0], sizes = [128, 4], strides = [1, 1]} : vector<256x4xf32> to vector<128x4xf32>
    %cst_33 = arith.constant dense<0.000000e+00> : vector<32x128xf32>
    %45 = tpu.matmul %2, %44, %cst_33 {dimension_numbers = #tpu.dot_dimension_numbers<[1], [1], [0], [0], [0, 0, 1, 0], [], []>} : vector<32x4xf32>, vector<128x4xf32>, vector<32x128xf32> -> vector<32x128xf32>
    %46 = vector.broadcast %12 : vector<32x1xf32> to vector<32x128xf32>
    %47 = arith.addf %45, %46 : vector<32x128xf32>
    %48 = math.tanh %47 : vector<32x128xf32>
    %cst_34 = arith.constant dense<0.000000e+00> : vector<32x128xf32>
    %49 = tpu.matmul %4, %48, %cst_34 {dimension_numbers = #tpu.dot_dimension_numbers<[1], [0], [0], [1], [0, 0, 1, 1], [], []>} : vector<32x32xf32>, vector<32x128xf32>, vector<32x128xf32> -> vector<32x128xf32>
    %50 = vector.broadcast %14 : vector<32x1xf32> to vector<32x128xf32>
    %51 = arith.addf %49, %50 : vector<32x128xf32>
    %52 = math.tanh %51 : vector<32x128xf32>
    %cst_35 = arith.constant dense<0.000000e+00> : vector<32x128xf32>
    %53 = tpu.matmul %6, %52, %cst_35 {dimension_numbers = #tpu.dot_dimension_numbers<[1], [0], [0], [1], [0, 0, 1, 1], [], []>} : vector<32x32xf32>, vector<32x128xf32>, vector<32x128xf32> -> vector<32x128xf32>
    %54 = vector.broadcast %16 : vector<32x1xf32> to vector<32x128xf32>
    %55 = arith.addf %53, %54 : vector<32x128xf32>
    %56 = math.tanh %55 : vector<32x128xf32>
    %cst_36 = arith.constant dense<0.000000e+00> : vector<32x128xf32>
    %57 = tpu.matmul %8, %56, %cst_36 {dimension_numbers = #tpu.dot_dimension_numbers<[1], [0], [0], [1], [0, 0, 1, 1], [], []>} : vector<32x32xf32>, vector<32x128xf32>, vector<32x128xf32> -> vector<32x128xf32>
    %58 = vector.broadcast %18 : vector<32x1xf32> to vector<32x128xf32>
    %59 = arith.addf %57, %58 : vector<32x128xf32>
    %60 = math.tanh %59 : vector<32x128xf32>
    %cst_37 = arith.constant dense<0.000000e+00> : vector<32x128xf32>
    %61 = tpu.matmul %10, %60, %cst_37 {dimension_numbers = #tpu.dot_dimension_numbers<[1], [0], [0], [1], [0, 0, 1, 1], [], []>} : vector<32x32xf32>, vector<32x128xf32>, vector<32x128xf32> -> vector<32x128xf32>
    %62 = vector.broadcast %20 : vector<32x1xf32> to vector<32x128xf32>
    %63 = arith.addf %61, %62 : vector<32x128xf32>
    %64 = vector.extract_strided_slice %63 {offsets = [0, 0], sizes = [2, 128], strides = [1, 1]} : vector<32x128xf32> to vector<2x128xf32>
    %c0_38 = arith.constant 0 : index
    %c128 = arith.constant 128 : index
    %65 = vector.load %arg4[%c0_38, %c128] : memref<2x256xf32, #tpu.memory_space<vmem>>, vector<2x128xf32>
    tpu.vector_store %arg4[%c0_38, %c128], %64 {strides = array<i32>} : memref<2x256xf32, #tpu.memory_space<vmem>>, vector<2x128xf32>,
    return
  }
  func.func @transform_0(%arg0: i32) -> (i32, i32) {
    %c0_i32 = arith.constant 0 : i32
    %c0_i32_0 = arith.constant 0 : i32
    return %arg0, %c0_i32 : i32, i32
  }
  func.func @transform_1(%arg0: i32) -> (i32, i32, i32) {
    %c0_i32 = arith.constant 0 : i32
    %c0_i32_0 = arith.constant 0 : i32
    %c0_i32_1 = arith.constant 0 : i32
    %c0_i32_2 = arith.constant 0 : i32
    return %c0_i32, %c0_i32_0, %c0_i32_1 : i32, i32, i32
  }
  func.func @transform_2(%arg0: i32) -> (i32, i32, i32) {
    %c0_i32 = arith.constant 0 : i32
    %c0_i32_0 = arith.constant 0 : i32
    %c0_i32_1 = arith.constant 0 : i32
    %c0_i32_2 = arith.constant 0 : i32
    return %c0_i32, %c0_i32_0, %c0_i32_1 : i32, i32, i32
  }
  func.func @transform_3(%arg0: i32) -> (i32, i32) {
    %c0_i32 = arith.constant 0 : i32
    %c0_i32_0 = arith.constant 0 : i32
    return %c0_i32, %arg0 : i32, i32
  }
}

</mosaic_0001>

<bundles_post_ra>
// kernel: particular_forward.1
= control target key start
LH: loop header
LB: loop body
LE: loop exit
PB: predicated region body
PF: predicated region fallthrough
CT: control target
= control target key end

     0   :  { %vm115_vm0 = vcmask 31744   ;;  %v1890_v6 = vmov 0   ;;  %s2385_s0 = inlined_call_operand.vmem [shape: f32[256,4], index: 0, kind: input, shape index: {}]   ;;  %s2386_s1 = inlined_call_operand.vmem [shape: f32[5,32,32], index: 1, kind: input, shape index: {}]   ;;  %s2387_s2 = inlined_call_operand.vmem [shape: f32[5,32,1], index: 2, kind: input, shape index: {}]   ;;  %s2388_s3 = inlined_call_operand.hbm [shape: f32[2,256], index: 3, kind: output, shape index: {}]  }
   0x1   :  { %v63_v0 = vld [vmem:[%s2385_s0] sm:$0xff]  ;;  %v64_v1 = vld [vmem:[%s2385_s0 + $0x8] sm:$0xff]  ;;  %v65_v2 = vld [vmem:[%s2385_s0 + $0x10] sm:$0xff]  ;;  %1800 = vset.pattern.permute.xlu0 %v1890_v6  ;;  %1801 = vset.pattern.permute.xlu1 %v1890_v6 }
   0x2   :  { %v1638_v3 = vpack.c.bf16 %v64_v1, %v63_v0  ;;  %vm1923_vm1 = vmpackc.low %vm115_vm0, %vm115_vm0  ;;  %v66_v5 = vld [vmem:[%s2385_s0 + $0x18] sm:$0xff]  ;;  %v1939_v8 = vld [vmem:[%s2386_s1] sm:$0xff] }
   0x3   :  { %v1644_v7 = vpack.c.bf16 %v66_v5, %v65_v2  ;;  %v67_v9 = vld [vmem:[%s2385_s0 + $0x20] sm:$0xff]  ;;  %v68_v10 = vld [vmem:[%s2385_s0 + $0x28] sm:$0xff]  ;;  %1482 = vmatprep.mubr.msk.f32.mxu0 %vm115_vm0, %v1939_v8  ;;  %v41_v12 = vld [vmem:[%s2387_s2 + $0x10] sm:$0xff] }
   0x4   :  { %1640 = vmatprep.subr.msk.bf16.mxu0 %vm1923_vm1, %v1638_v3  ;;  %v39_v11 = vld [vmem:[%s2387_s2] sm:$0xff]  ;;  %107 = vperm.xlu1 %1801, %v41_v12   ;;  %v1650_v13 = vpack.c.bf16 %v68_v10, %v67_v9  ;;  %v40_v14 = vld [vmem:[%s2387_s2 + $0x8] sm:$0xff]  ;;  %v42_v15 = vld [vmem:[%s2387_s2 + $0x18] sm:$0xff] }
   0x5   :  { %1643 = vmatpush3.bf16.xpose.msk.msra.mxu0 %vm1923_vm1, %v1638_v3  ;;  %97 = vperm.xlu0 %1800, %v39_v11  }
   0x6   :  { %1646 = vmatprep.subr.msk.bf16.mxu0 %vm1923_vm1, %v1644_v7 }
   0x9   :  { %102 = vperm.xlu0 %1800, %v40_v14  }
   0xd   :  { %1649 = vmatpush3.bf16.xpose.msk.msra.mxu0 %vm1923_vm1, %v1644_v7 }
   0xe   :  { %8 = vsyncpa [#allocation3], 0  ;;  %1652 = vmatprep.subr.msk.bf16.mxu0 %vm1923_vm1, %v1650_v13  ;;  %v1258_v16 = vld [vmem:[%s2387_s2 + $0x20] sm:$0xff]  ;;  %112 = vperm.xlu1 %1801, %v42_v15   ;;  %v69_v17 = vld [vmem:[%s2385_s0 + $0x30] sm:$0xff]  ;;  %vm285_vm2 = vcmask 261120  }
   0xf   :  { %v70_v18 = vld [vmem:[%s2385_s0 + $0x38] sm:$0xff]  ;;  %v1259_v19 = vld [vmem:[%s2387_s2 + $0x28] sm:$0xff]  ;;  %267 = vperm.xlu0 %1800, %v1258_v16   ;;  %v1260_v21 = vld [vmem:[%s2387_s2 + $0x30] sm:$0xff] }
  0x10   :  { %v1656_v20 = vpack.c.bf16 %v70_v18, %v69_v17  ;;  %v1261_v22 = vld [vmem:[%s2387_s2 + $0x38] sm:$0xff]  ;;  %v1262_v23 = vld [vmem:[%s2387_s2 + $0x40] sm:$0xff]  ;;  %v72_v25 = vld [vmem:[%s2385_s0 + $0x48] sm:$0xff] }
  0x11   :  { %v71_v24 = vld [vmem:[%s2385_s0 + $0x40] sm:$0xff]  ;;  %v1263_v26 = vld [vmem:[%s2387_s2 + $0x48] sm:$0xff]  ;;  %v1264_v28 = vld [vmem:[%s2387_s2 + $0x50] sm:$0xff] }
  0x12   :  { %272 = vperm.xlu1 %1801, %v1259_v19   ;;  %v1662_v27 = vpack.c.bf16 %v72_v25, %v71_v24  ;;  %v1265_v29 = vld [vmem:[%s2387_s2 + $0x58] sm:$0xff]  ;;  %v1266_v30 = vld [vmem:[%s2387_s2 + $0x60] sm:$0xff]  ;;  %v73_v31 = vld [vmem:[%s2385_s0 + $0x50] sm:$0xff] }
  0x13   :  { %277 = vperm.xlu0 %1800, %v1260_v21   ;;  %v74_v32 = vld [vmem:[%s2385_s0 + $0x58] sm:$0xff]  ;;  %v1267_v33 = vld [vmem:[%s2387_s2 + $0x68] sm:$0xff]  ;;  %v1268_v35 = vld [vmem:[%s2387_s2 + $0x70] sm:$0xff] }
  0x14   :  { %v1668_v34 = vpack.c.bf16 %v74_v32, %v73_v31  ;;  %v1269_v36 = vld [vmem:[%s2387_s2 + $0x78] sm:$0xff]  ;;  %v1270_v37 = vld [vmem:[%s2387_s2 + $0x80] sm:$0xff]  ;;  %v76_v39 = vld [vmem:[%s2385_s0 + $0x68] sm:$0xff] }
  0x15   :  { %1655 = vmatpush3.bf16.xpose.msk.msra.mxu0 %vm1923_vm1, %v1650_v13  ;;  %v75_v38 = vld [vmem:[%s2385_s0 + $0x60] sm:$0xff]  ;;  %v77_v41 = vld [vmem:[%s2385_s0 + $0x70] sm:$0xff]  ;;  %v78_v42 = vld [vmem:[%s2385_s0 + $0x78] sm:$0xff] }
  0x16   :  { %1658 = vmatprep.subr.msk.bf16.mxu0 %vm1923_vm1, %v1656_v20  ;;  %282 = vperm.xlu1 %1801, %v1261_v22   ;;  %v1674_v40 = vpack.c.bf16 %v76_v39, %v75_v38  ;;  %v1680_v43 = vpack.c.bf16 %v78_v42, %v77_v41  ;;  %v2059_v44 = vld [vmem:[%s2386_s1 + $0x8] sm:$0xff]  ;;  %v2064_v45 = vld [vmem:[%s2386_s1 + $0x10] sm:$0xff]  ;;  %v2073_v46 = vld [vmem:[%s2386_s1 + $0x18] sm:$0xff] }
  0x17   :  { %389 = vperm.xlu0 %1800, %v1262_v23   ;;  %v1242_v47 = vld [vmem:[%s2386_s1 + $0x20] sm:$0xff]  ;;  %v2097_v2 = vld [vmem:[%s2386_s1 + $0x28] sm:$0xff]  ;;  %v2102_v3 = vld [vmem:[%s2386_s1 + $0x30] sm:$0xff] }
  0x18   :  { %1496 = vmatprep.mubr.msk.f32.mxu1 %vm285_vm2, %v1242_v47  ;;  %v2111_v5 = vld [vmem:[%s2386_s1 + $0x38] sm:$0xff]  ;;  %v2118_v6 = vld [vmem:[%s2386_s1 + $0x40] sm:$0xff] }
  0x1a   :  { %394 = vperm.xlu1 %1801, %v1263_v26   ;;  %v2137_v26 = vld [vmem:[%s2386_s1 + $0x48] sm:$0xff] }
  0x1b   :  { %399 = vperm.xlu0 %1800, %v1264_v28   ;;  %v2151_v28 = vld [vmem:[%s2386_s1 + $0x58] sm:$0xff] }
  0x1d   :  { %1661 = vmatpush3.bf16.xpose.msk.msra.mxu0 %vm1923_vm1, %v1656_v20 }
  0x1e   :  { %1664 = vmatprep.subr.msk.bf16.mxu0 %vm1923_vm1, %v1662_v27  ;;  %404 = vperm.xlu1 %1801, %v1265_v29   ;;  %v2158_v29 = vld [vmem:[%s2386_s1 + $0x60] sm:$0xff] }
  0x1f   :  { %510 = vperm.xlu0 %1800, %v1266_v30  }
  0x22   :  { %515 = vperm.xlu1 %1801, %v1267_v33  }
  0x23   :  { %520 = vperm.xlu0 %1800, %v1268_v35  }
  0x25   :  { %1667 = vmatpush3.bf16.xpose.msk.msra.mxu0 %vm1923_vm1, %v1662_v27  ;;  %v2142_v27 = vld [vmem:[%s2386_s1 + $0x50] sm:$0xff] }
  0x26   :  { %1670 = vmatprep.subr.msk.bf16.mxu0 %vm1923_vm1, %v1668_v34  ;;  %525 = vperm.xlu1 %1801, %v1269_v36  }
  0x27   :  { %631 = vperm.xlu0 %1800, %v1270_v37  }
  0x2d   :  { %1673 = vmatpush3.bf16.xpose.msk.msra.mxu0 %vm1923_vm1, %v1668_v34 }
  0x2e   :  { %1676 = vmatprep.subr.msk.bf16.mxu0 %vm1923_vm1, %v1674_v40 }
  0x35   :  { %1679 = vmatpush3.bf16.xpose.msk.msra.mxu0 %vm1923_vm1, %v1674_v40 }
  0x36   :  { %1682 = vmatprep.subr.msk.bf16.mxu0 %vm1923_vm1, %v1680_v43 }
  0x3d   :  { %1685 = vmatpush3.bf16.xpose.msk.msra.mxu0 %vm1923_vm1, %v1680_v43 }
  0x44   :  { %1483 = vmatmul.mubr.msk.f32.vlgmr.msra.gmra.mrb[0].mxu0 %vm115_vm0, %v2059_v44 }
  0x45   :  { %1485 = vmatprep.mubr.msk.f32.mxu0 %vm115_vm0, %v2064_v45 }
  0x48   :  { %1486 = vmatmul.mubr.msk.f32.gmra.mrb[2].mxu0 %vm115_vm0, %v2073_v46 }
  0x49   :  { %1590 = vmatprep.mubr.msk.f32.mxu0 %vm285_vm2, %v1242_v47 }
  0x83   :  { %v2084_v49 = vpop.permute.xlu1 %107 }
  0x84   :  { %v2082_v48 = vpop.permute.xlu0 %97 }
  0x88   :  { %v2086_v50 = vpop.permute.xlu0 %102 }
  0x8d   :  { %v2090_v55 = vpop.permute.xlu1 %112 }
  0x8e   :  { %v2124_v9 = vpop.permute.xlu0 %267 }
  0x91   :  { %v2122_v7 = vpop.permute.xlu1 %272 }
  0x92   :  { %v2130_v16 = vpop.permute.xlu0 %277 }
  0x95   :  { %v2128_v14 = vpop.permute.xlu1 %282 }
  0x96   :  { %v2164_v31 = vpop.permute.xlu0 %389 }
  0x99   :  { %v2162_v30 = vpop.permute.xlu1 %394 }
  0x9a   :  { %v2170_v38 = vpop.permute.xlu0 %399 }
  0x9d   :  { %v2168_v36 = vpop.permute.xlu1 %404 }
 0x117   :  { %v1484_v51 = vpop.f32.mrb[0].mxu0 }
 0x118   :  { %v248_v52 = vadd.f32 %v1484_v51, %v2086_v50  ;;  %v242_v53 = vpop.f32.mrb[1].mxu0 }
 0x119   :  { %v243_v54 = vadd.f32 %v242_v53, %v2082_v48 }
 0x11a   :  { %1802 = vtanh.f32 %v248_v52 }
 0x11b   :  { %1804 = vtanh.f32 %v243_v54  ;;  %v1487_v56 = vpop.f32.mrb[2].mxu0  ;;  %v2177_v54 = vld [vmem:[%s2386_s1 + $0x68] sm:$0xff] }
 0x11c   :  { %v258_v57 = vadd.f32 %v1487_v56, %v2090_v55  ;;  %v252_v58 = vpop.f32.mrb[3].mxu0  ;;  %v2182_v56 = vld [vmem:[%s2386_s1 + $0x70] sm:$0xff] }
 0x11d   :  { %v253_v59 = vadd.f32 %v252_v58, %v2084_v49  ;;  %v2198_v58 = vld [vmem:[%s2386_s1 + $0x80] sm:$0xff] }
 0x11e   :  { %1806 = vtanh.f32 %v258_v57  ;;  %v2191_v57 = vld [vmem:[%s2386_s1 + $0x78] sm:$0xff] }
 0x11f   :  { %1808 = vtanh.f32 %v253_v59  ;;  %v2202_v59 = vpop.permute.xlu1 %515 }
 0x124   :  { %v1803_v60 = vpop.eup %1802 }
 0x125   :  { %v1805_v61 = vpop.eup %1804 }
 0x126   :  { %v1686_v62 = vpack.c.bf16 %v1803_v60, %v1805_v61  ;;  %v2204_v60 = vpop.permute.xlu0 %510 }
 0x128   :  { %v1807_v63 = vpop.eup %1806  ;;  %1687 = vmatprep.subr.bf16.mxu1 %v1686_v62 }
 0x129   :  { %v1809_v0 = vpop.eup %1808  ;;  %1689 = vmatpush3.bf16.msra.mxu1 %v1686_v62 }
 0x12a   :  { %v1690_v1 = vpack.c.bf16 %v1807_v63, %v1809_v0 }
 0x12c   :  { %1691 = vmatprep.subr.bf16.mxu1 %v1690_v1 }
 0x12d   :  { %1693 = vmatpush3.bf16.msra.mxu1 %v1690_v1  ;;  %v2208_v1 = vpop.permute.xlu1 %525 }
 0x130   :  { %1497 = vmatmul.mubr.msk.f32.vlgmr.msra.gmra.mrb[0].mxu1 %vm285_vm2, %v2097_v2 }
 0x131   :  { %1499 = vmatprep.mubr.msk.f32.mxu1 %vm285_vm2, %v2102_v3 }
 0x134   :  { %1500 = vmatmul.mubr.msk.f32.gmra.mrb[2].mxu1 %vm285_vm2, %v2111_v5 }
 0x135   :  { %1510 = vmatprep.mubr.msk.f32.mxu1 %vm285_vm2, %v2118_v6 }
 0x203   :  { %v1498_v10 = vpop.f32.mrb[0].mxu1 }
 0x204   :  { %v370_v11 = vadd.f32 %v1498_v10, %v2122_v7  ;;  %v364_v12 = vpop.f32.mrb[1].mxu1 }
 0x205   :  { %v365_v13 = vadd.f32 %v364_v12, %v2124_v9 }
 0x206   :  { %1810 = vtanh.f32 %v370_v11  ;;  %v2210_v11 = vpop.permute.xlu0 %520 }
 0x207   :  { %1812 = vtanh.f32 %v365_v13  ;;  %v1501_v15 = vpop.f32.mrb[2].mxu1 }
 0x208   :  { %v380_v17 = vadd.f32 %v1501_v15, %v2128_v14  ;;  %v374_v18 = vpop.f32.mrb[3].mxu1 }
 0x209   :  { %v375_v19 = vadd.f32 %v374_v18, %v2130_v16 }
 0x20a   :  { %1814 = vtanh.f32 %v380_v17 }
 0x20b   :  { %1816 = vtanh.f32 %v375_v19 }
 0x210   :  { %v1811_v20 = vpop.eup %1810 }
 0x211   :  { %v1813_v21 = vpop.eup %1812 }
 0x212   :  { %v1694_v22 = vpack.c.bf16 %v1811_v20, %v1813_v21  ;;  %v79_v20 = vld [vmem:[%s2385_s0 + $0x80] sm:$0xff]  ;;  %v80_v21 = vld [vmem:[%s2385_s0 + $0x88] sm:$0xff] }
 0x214   :  { %v1815_v23 = vpop.eup %1814  ;;  %1695 = vmatprep.subr.bf16.mxu1 %v1694_v22 }
 0x215   :  { %v1817_v24 = vpop.eup %1816  ;;  %1697 = vmatpush3.bf16.msra.mxu1 %v1694_v22 }
 0x216   :  { %v1698_v25 = vpack.c.bf16 %v1815_v23, %v1817_v24 }
 0x218   :  { %1699 = vmatprep.subr.bf16.mxu1 %v1698_v25 }
 0x219   :  { %1701 = vmatpush3.bf16.msra.mxu1 %v1698_v25  ;;  %v1718_v25 = vpack.c.bf16 %v80_v21, %v79_v20 }
 0x21c   :  { %1511 = vmatmul.mubr.msk.f32.vlgmr.msra.gmra.mrb[4].mxu1 %vm285_vm2, %v2137_v26 }
 0x21d   :  { %1513 = vmatprep.mubr.msk.f32.mxu1 %vm285_vm2, %v2142_v27 }
 0x220   :  { %1514 = vmatmul.mubr.msk.f32.gmra.mrb[6].mxu1 %vm285_vm2, %v2151_v28 }
 0x221   :  { %1524 = vmatprep.mubr.msk.f32.mxu1 %vm285_vm2, %v2158_v29 }
 0x2ef   :  { %v1512_v32 = vpop.f32.mrb[4].mxu1 }
 0x2f0   :  { %v491_v33 = vadd.f32 %v1512_v32, %v2162_v30  ;;  %v485_v34 = vpop.f32.mrb[5].mxu1  ;;  %v2223_v32 = vld [vmem:[%s2386_s1 + $0x88] sm:$0xff] }
 0x2f1   :  { %v486_v35 = vadd.f32 %v485_v34, %v2164_v31  ;;  %v81_v34 = vld [vmem:[%s2385_s0 + $0x90] sm:$0xff] }
 0x2f2   :  { %1818 = vtanh.f32 %v491_v33  ;;  %v2230_v33 = vld [vmem:[%s2386_s1 + $0x90] sm:$0xff] }
 0x2f3   :  { %1820 = vtanh.f32 %v486_v35  ;;  %v1515_v37 = vpop.f32.mrb[6].mxu1  ;;  %v82_v35 = vld [vmem:[%s2385_s0 + $0x98] sm:$0xff] }
 0x2f4   :  { %v501_v39 = vadd.f32 %v1515_v37, %v2168_v36  ;;  %v495_v40 = vpop.f32.mrb[7].mxu1  ;;  %v2245_v37 = vld [vmem:[%s2386_s1 + $0x98] sm:$0xff] }
 0x2f5   :  { %v496_v41 = vadd.f32 %v495_v40, %v2170_v38  ;;  %v83_v40 = vld [vmem:[%s2385_s0 + $0xa0] sm:$0xff] }
 0x2f6   :  { %1822 = vtanh.f32 %v501_v39  ;;  %v1724_v39 = vpack.c.bf16 %v82_v35, %v81_v34 }
 0x2f7   :  { %1824 = vtanh.f32 %v496_v41  ;;  %v84_v41 = vld [vmem:[%s2385_s0 + $0xa8] sm:$0xff] }
 0x2fc   :  { %v1819_v42 = vpop.eup %1818 }
 0x2fd   :  { %v1821_v43 = vpop.eup %1820 }
 0x2fe   :  { %v1702_v47 = vpack.c.bf16 %v1819_v42, %v1821_v43  ;;  %v1730_v42 = vpack.c.bf16 %v84_v41, %v83_v40  ;;  %v86_v43 = vld [vmem:[%s2385_s0 + $0xb8] sm:$0xff] }
 0x300   :  { %v1823_v51 = vpop.eup %1822  ;;  %1703 = vmatprep.subr.bf16.mxu1 %v1702_v47 }
 0x301   :  { %v1825_v52 = vpop.eup %1824  ;;  %1705 = vmatpush3.bf16.msra.mxu1 %v1702_v47 }
 0x302   :  { %v1706_v53 = vpack.c.bf16 %v1823_v51, %v1825_v52  ;;  %v87_v51 = vld [vmem:[%s2385_s0 + $0xc0] sm:$0xff]  ;;  %v88_v52 = vld [vmem:[%s2385_s0 + $0xc8] sm:$0xff] }
 0x304   :  { %1707 = vmatprep.subr.bf16.mxu1 %v1706_v53 }
 0x305   :  { %1709 = vmatpush3.bf16.msra.mxu1 %v1706_v53  ;;  %v1742_v53 = vpack.c.bf16 %v88_v52, %v87_v51 }
 0x308   :  { %1525 = vmatmul.mubr.msk.f32.vlgmr.msra.gmra.mrb[8].mxu1 %vm285_vm2, %v2177_v54 }
 0x309   :  { %1527 = vmatprep.mubr.msk.f32.mxu1 %vm285_vm2, %v2182_v56 }
 0x30c   :  { %1528 = vmatmul.mubr.msk.f32.gmra.mrb[10].mxu1 %vm285_vm2, %v2191_v57 }
 0x30d   :  { %1538 = vmatprep.mubr.msk.f32.mxu1 %vm285_vm2, %v2198_v58 }
 0x3db   :  { %v1526_v61 = vpop.f32.mrb[8].mxu1 }
 0x3dc   :  { %v612_v62 = vadd.f32 %v1526_v61, %v2202_v59  ;;  %v606_v63 = vpop.f32.mrb[9].mxu1  ;;  %v89_v61 = vld [vmem:[%s2385_s0 + $0xd0] sm:$0xff] }
 0x3dd   :  { %v607_v0 = vadd.f32 %v606_v63, %v2204_v60 }
 0x3de   :  { %1826 = vtanh.f32 %v612_v62  ;;  %v90_v62 = vld [vmem:[%s2385_s0 + $0xd8] sm:$0xff] }
 0x3df   :  { %1828 = vtanh.f32 %v607_v0  ;;  %v1529_v10 = vpop.f32.mrb[10].mxu1  ;;  %v1748_v63 = vpack.c.bf16 %v90_v62, %v89_v61  ;;  %v91_v0 = vld [vmem:[%s2385_s0 + $0xe0] sm:$0xff] }
 0x3e0   :  { %v622_v12 = vadd.f32 %v1529_v10, %v2208_v1  ;;  %v616_v13 = vpop.f32.mrb[11].mxu1  ;;  %v92_v10 = vld [vmem:[%s2385_s0 + $0xe8] sm:$0xff] }
 0x3e1   :  { %v617_v15 = vadd.f32 %v616_v13, %v2210_v11  ;;  %v93_v13 = vld [vmem:[%s2385_s0 + $0xf0] sm:$0xff] }
 0x3e2   :  { %1830 = vtanh.f32 %v622_v12  ;;  %v1754_v12 = vpack.c.bf16 %v92_v10, %v91_v0 }
 0x3e3   :  { %1832 = vtanh.f32 %v617_v15  ;;  %v94_v15 = vld [vmem:[%s2385_s0 + $0xf8] sm:$0xff] }
 0x3e8   :  { %v1827_v17 = vpop.eup %1826 }
 0x3e9   :  { %v1829_v18 = vpop.eup %1828 }
 0x3ea   :  { %v1710_v19 = vpack.c.bf16 %v1827_v17, %v1829_v18  ;;  %v1760_v17 = vpack.c.bf16 %v94_v15, %v93_v13 }
 0x3ec   :  { %v1831_v22 = vpop.eup %1830  ;;  %1711 = vmatprep.subr.bf16.mxu1 %v1710_v19 }
 0x3ed   :  { %v1833_v23 = vpop.eup %1832  ;;  %1713 = vmatpush3.bf16.msra.mxu1 %v1710_v19  ;;  %v2323_v19 = vpop.permute.xlu0 %631 }
 0x3ee   :  { %v1714_v24 = vpack.c.bf16 %v1831_v22, %v1833_v23 }
 0x3f0   :  { %1715 = vmatprep.subr.bf16.mxu1 %v1714_v24 }
 0x3f1   :  { %1717 = vmatpush3.bf16.msra.mxu1 %v1714_v24 }
 0x3f2   :  { %1720 = vmatprep.subr.msk.bf16.mxu1 %vm1923_vm1, %v1718_v25 }
 0x3f4   :  { %1539 = vmatmul.mubr.msk.f32.vlgmr.msra.gmra.mrb[12].mxu1 %vm285_vm2, %v2223_v32 }
 0x3f5   :  { %1541 = vmatprep.mubr.msk.f32.mxu1 %vm285_vm2, %v2230_v33 }
 0x3f8   :  { %1542 = vmatmul.mubr.msk.f32.gmra.mrb[14].mxu1 %vm285_vm2, %v2245_v37 }
 0x3f9   :  { %1576 = vmatprep.mubr.msk.f32.mxu1 %vm115_vm0, %v1939_v8  ;;  %v85_v8 = vld [vmem:[%s2385_s0 + $0xb0] sm:$0xff]  ;;  %s1891_s0 = smov [#allocation2]  }
 0x3fa   :  { %1723 = vmatpush3.bf16.xpose.msk.msra.mxu1 %vm1923_vm1, %v1718_v25  ;;  %v1736_v47 = vpack.c.bf16 %v86_v43, %v85_v8  ;;  %s1234_s11 = sshll.u32 %s1891_s0, 4  ;;  %s1235_s11 = int_to_ptr.vmem [resolvable:$true] %s1234_s11 }
 0x3fb   :  { %1726 = vmatprep.subr.msk.bf16.mxu1 %vm1923_vm1, %v1724_v39  ;;  %s1866_s12 = scalar_lea.vmem %s1235_s11, 64  ;;  %p1871_p1 = scmp.lt.s32.totalorder %s1235_s11, %s1235_s11 }
 0x3fc   :  { %p1867_p0 = scmp.ne.s32.totalorder %s1235_s11, %s1866_s12  ;;  %p1872_p2 = scmp.lt.s32.totalorder %s1866_s12, %s1866_s12 }
 0x3fe   :  { %p1873_p3 = por %p1872_p2, %p1871_p1 }
 0x400   :  { %p1874_p4 = pnand %p1873_p3, %p1867_p0 }
 0x402   :  { %1729 = vmatpush3.bf16.xpose.msk.msra.mxu1 %vm1923_vm1, %v1724_v39 }
 0x403   :  { %1732 = vmatprep.subr.msk.bf16.mxu1 %vm1923_vm1, %v1730_v42 }
 0x40a   :  { %1735 = vmatpush3.bf16.xpose.msk.msra.mxu1 %vm1923_vm1, %v1730_v42 }
 0x40b   :  { %1738 = vmatprep.subr.msk.bf16.mxu1 %vm1923_vm1, %v1736_v47 }
 0x412   :  { %1741 = vmatpush3.bf16.xpose.msk.msra.mxu1 %vm1923_vm1, %v1736_v47 }
 0x413   :  { %1744 = vmatprep.subr.msk.bf16.mxu1 %vm1923_vm1, %v1742_v53 }
 0x41a   :  { %1747 = vmatpush3.bf16.xpose.msk.msra.mxu1 %vm1923_vm1, %v1742_v53 }
 0x41b   :  { %1750 = vmatprep.subr.msk.bf16.mxu1 %vm1923_vm1, %v1748_v63 }
 0x422   :  { %1753 = vmatpush3.bf16.xpose.msk.msra.mxu1 %vm1923_vm1, %v1748_v63 }
 0x423   :  { %1756 = vmatprep.subr.msk.bf16.mxu1 %vm1923_vm1, %v1754_v12 }
 0x42a   :  { %1759 = vmatpush3.bf16.xpose.msk.msra.mxu1 %vm1923_vm1, %v1754_v12 }
 0x42b   :  { %1762 = vmatprep.subr.msk.bf16.mxu1 %vm1923_vm1, %v1760_v17 }
 0x432   :  { %1765 = vmatpush3.bf16.xpose.msk.msra.mxu1 %vm1923_vm1, %v1760_v17 }
 0x439   :  { %1577 = vmatmul.mubr.msk.f32.vlgmr.msra.gmra.mrb[16].mxu1 %vm115_vm0, %v2059_v44 }
 0x43a   :  { %1579 = vmatprep.mubr.msk.f32.mxu1 %vm115_vm0, %v2064_v45 }
 0x43d   :  { %1580 = vmatmul.mubr.msk.f32.gmra.mrb[18].mxu1 %vm115_vm0, %v2073_v46 }
 0x4c7   :  { %v1540_v18 = vpop.f32.mrb[12].mxu1 }
 0x4c8   :  { %v724_v20 = vpop.f32.mrb[13].mxu1 }
 0x4c9   :  { %v725_v21 = vadd.f32 %v724_v20, %v2323_v19 }
 0x4cb   :  { %740 = vst [vmem:[#allocation2] sm:$0x3] %v725_v21  ;;  %v1543_v22 = vpop.f32.mrb[14].mxu1 }
 0x4cc   :  { %v733_v23 = vpop.f32.mrb[15].mxu1 }
 0x50c   :  { %v1578_v4 = vpop.f32.mrb[16].mxu1 }
 0x50d   :  { %v861_v24 = vadd.f32 %v1578_v4, %v2086_v50  ;;  %v855_v25 = vpop.f32.mrb[17].mxu1 }
 0x50e   :  { %v856_v44 = vadd.f32 %v855_v25, %v2082_v48 }
 0x50f   :  { %1834 = vtanh.f32 %v861_v24 }
 0x510   :  { %1836 = vtanh.f32 %v856_v44  ;;  %v1581_v45 = vpop.f32.mrb[18].mxu1 }
 0x511   :  { %v871_v46 = vadd.f32 %v1581_v45, %v2090_v55  ;;  %v865_v34 = vpop.f32.mrb[19].mxu1 }
 0x512   :  { %v866_v35 = vadd.f32 %v865_v34, %v2084_v49 }
 0x513   :  { %1838 = vtanh.f32 %v871_v46 }
 0x514   :  { %1840 = vtanh.f32 %v866_v35 }
 0x519   :  { %v1835_v39 = vpop.eup %1834 }
 0x51a   :  { %v1837_v40 = vpop.eup %1836 }
 0x51b   :  { %v1766_v41 = vpack.c.bf16 %v1835_v39, %v1837_v40 }
 0x51d   :  { %v1839_v42 = vpop.eup %1838  ;;  %1767 = vmatprep.subr.bf16.mxu0 %v1766_v41 }
 0x51e   :  { %v1841_v8 = vpop.eup %1840  ;;  %1769 = vmatpush3.bf16.msra.mxu0 %v1766_v41 }
 0x51f   :  { %v1770_v50 = vpack.c.bf16 %v1839_v42, %v1841_v8 }
 0x521   :  { %1771 = vmatprep.subr.bf16.mxu0 %v1770_v50 }
 0x522   :  { %1773 = vmatpush3.bf16.msra.mxu0 %v1770_v50 }
 0x525   :  { %1591 = vmatmul.mubr.msk.f32.vlgmr.msra.gmra.mrb[4].mxu0 %vm285_vm2, %v2097_v2 }
 0x526   :  { %1593 = vmatprep.mubr.msk.f32.mxu0 %vm285_vm2, %v2102_v3 }
 0x529   :  { %1594 = vmatmul.mubr.msk.f32.gmra.mrb[6].mxu0 %vm285_vm2, %v2111_v5 }
 0x52a   :  { %1604 = vmatprep.mubr.msk.f32.mxu0 %vm285_vm2, %v2118_v6 }
 0x5f8   :  { %v1592_v48 = vpop.f32.mrb[4].mxu0 }
 0x5f9   :  { %v950_v49 = vadd.f32 %v1592_v48, %v2122_v7  ;;  %v944_v55 = vpop.f32.mrb[5].mxu0 }
 0x5fa   :  { %v945_v43 = vadd.f32 %v944_v55, %v2124_v9 }
 0x5fb   :  { %1842 = vtanh.f32 %v950_v49 }
 0x5fc   :  { %1844 = vtanh.f32 %v945_v43  ;;  %v1595_v47 = vpop.f32.mrb[6].mxu0 }
 0x5fd   :  { %v960_v2 = vadd.f32 %v1595_v47, %v2128_v14  ;;  %v954_v51 = vpop.f32.mrb[7].mxu0 }
 0x5fe   :  { %v955_v3 = vadd.f32 %v954_v51, %v2130_v16 }
 0x5ff   :  { %1846 = vtanh.f32 %v960_v2 }
 0x600   :  { %1848 = vtanh.f32 %v955_v3 }
 0x605   :  { %v1843_v5 = vpop.eup %1842 }
 0x606   :  { %v1845_v52 = vpop.eup %1844 }
 0x607   :  { %v1774_v53 = vpack.c.bf16 %v1843_v5, %v1845_v52 }
 0x609   :  { %v1847_v6 = vpop.eup %1846  ;;  %1775 = vmatprep.subr.bf16.mxu0 %v1774_v53 }
 0x60a   :  { %v1849_v61 = vpop.eup %1848  ;;  %1777 = vmatpush3.bf16.msra.mxu0 %v1774_v53 }
 0x60b   :  { %v1778_v7 = vpack.c.bf16 %v1847_v6, %v1849_v61 }
 0x60d   :  { %1779 = vmatprep.subr.bf16.mxu0 %v1778_v7 }
 0x60e   :  { %1781 = vmatpush3.bf16.msra.mxu0 %v1778_v7 }
 0x611   :  { %1605 = vmatmul.mubr.msk.f32.vlgmr.msra.gmra.mrb[8].mxu0 %vm285_vm2, %v2137_v26 }
 0x612   :  { %1607 = vmatprep.mubr.msk.f32.mxu0 %vm285_vm2, %v2142_v27 }
 0x615   :  { %1608 = vmatmul.mubr.msk.f32.gmra.mrb[10].mxu0 %vm285_vm2, %v2151_v28 }
 0x616   :  { %1618 = vmatprep.mubr.msk.f32.mxu0 %vm285_vm2, %v2158_v29 }
 0x6e4   :  { %v1606_v9 = vpop.f32.mrb[8].mxu0 }
 0x6e5   :  { %v1039_v14 = vadd.f32 %v1606_v9, %v2162_v30  ;;  %v1033_v16 = vpop.f32.mrb[9].mxu0 }
 0x6e6   :  { %v1034_v62 = vadd.f32 %v1033_v16, %v2164_v31 }
 0x6e7   :  { %1850 = vtanh.f32 %v1039_v14 }
 0x6e8   :  { %1852 = vtanh.f32 %v1034_v62  ;;  %v1609_v63 = vpop.f32.mrb[10].mxu0 }
 0x6e9   :  { %v1049_v26 = vadd.f32 %v1609_v63, %v2168_v36  ;;  %v1043_v0 = vpop.f32.mrb[11].mxu0 }
 0x6ea   :  { %v1044_v27 = vadd.f32 %v1043_v0, %v2170_v38 }
 0x6eb   :  { %1854 = vtanh.f32 %v1049_v26 }
 0x6ec   :  { %1856 = vtanh.f32 %v1044_v27 }
 0x6f1   :  { %v1851_v28 = vpop.eup %1850 }
 0x6f2   :  { %v1853_v10 = vpop.eup %1852 }
 0x6f3   :  { %v1782_v12 = vpack.c.bf16 %v1851_v28, %v1853_v10 }
 0x6f5   :  { %v1855_v29 = vpop.eup %1854  ;;  %1783 = vmatprep.subr.bf16.mxu0 %v1782_v12 }
 0x6f6   :  { %v1857_v13 = vpop.eup %1856  ;;  %1785 = vmatpush3.bf16.msra.mxu0 %v1782_v12 }
 0x6f7   :  { %v1786_v30 = vpack.c.bf16 %v1855_v29, %v1857_v13 }
 0x6f9   :  { %1787 = vmatprep.subr.bf16.mxu0 %v1786_v30 }
 0x6fa   :  { %1789 = vmatpush3.bf16.msra.mxu0 %v1786_v30 }
 0x6fd   :  { %1619 = vmatmul.mubr.msk.f32.vlgmr.msra.gmra.mrb[12].mxu0 %vm285_vm2, %v2177_v54 }
 0x6fe   :  { %1621 = vmatprep.mubr.msk.f32.mxu0 %vm285_vm2, %v2182_v56 }
 0x701   :  { %1622 = vmatmul.mubr.msk.f32.gmra.mrb[14].mxu0 %vm285_vm2, %v2191_v57 }
 0x702   :  { %1632 = vmatprep.mubr.msk.f32.mxu0 %vm285_vm2, %v2198_v58 }
 0x7d0   :  { %v1620_v31 = vpop.f32.mrb[12].mxu0 }
 0x7d1   :  { %v1128_v36 = vadd.f32 %v1620_v31, %v2202_v59  ;;  %v1122_v38 = vpop.f32.mrb[13].mxu0 }
 0x7d2   :  { %v1123_v15 = vadd.f32 %v1122_v38, %v2204_v60 }
 0x7d3   :  { %1858 = vtanh.f32 %v1128_v36 }
 0x7d4   :  { %1860 = vtanh.f32 %v1123_v15  ;;  %v1623_v17 = vpop.f32.mrb[14].mxu0 }
 0x7d5   :  { %v1138_v54 = vadd.f32 %v1623_v17, %v2208_v1  ;;  %v1132_v18 = vpop.f32.mrb[15].mxu0 }
 0x7d6   :  { %v1133_v56 = vadd.f32 %v1132_v18, %v2210_v11 }
 0x7d7   :  { %1862 = vtanh.f32 %v1138_v54 }
 0x7d8   :  { %1864 = vtanh.f32 %v1133_v56 }
 0x7dd   :  { %v1859_v57 = vpop.eup %1858 }
 0x7de   :  { %v1861_v20 = vpop.eup %1860 }
 0x7df   :  { %v1790_v21 = vpack.c.bf16 %v1859_v57, %v1861_v20 }
 0x7e1   :  { %v1863_v58 = vpop.eup %1862  ;;  %1791 = vmatprep.subr.bf16.mxu0 %v1790_v21 }
 0x7e2   :  { %v1865_v22 = vpop.eup %1864  ;;  %1793 = vmatpush3.bf16.msra.mxu0 %v1790_v21 }
 0x7e3   :  { %v1794_v59 = vpack.c.bf16 %v1863_v58, %v1865_v22 }
 0x7e5   :  { %1795 = vmatprep.subr.bf16.mxu0 %v1794_v59 }
 0x7e6   :  { %1797 = vmatpush3.bf16.msra.mxu0 %v1794_v59 }
 0x7e9   :  { %1633 = vmatmul.mubr.msk.f32.vlgmr.msra.gmra.mrb[16].mxu0 %vm285_vm2, %v2223_v32 }
 0x7ea   :  { %1635 = vmatprep.mubr.msk.f32.mxu0 %vm285_vm2, %v2230_v33 }
 0x7ed   :  { %1636 = vmatmul.mubr.msk.f32.gmra.mrb[18].mxu0 %vm285_vm2, %v2245_v37 }
 0x8bc   :  { %v1634_v60 = vpop.f32.mrb[16].mxu0 }
 0x8bd   :  { %v1211_v1 = vpop.f32.mrb[17].mxu0 }
 0x8be   :  { %v1212_v11 = vadd.f32 %v1211_v1, %v2323_v19 }
 0x8c0   :  { %1227 = vst [vmem:[#allocation2 + $0x2] sm:$0x3] %v1212_v11  ;;  %v1637_v23 = vpop.f32.mrb[18].mxu0 }
 0x8c1   :  { %v1220_v4 = vpop.f32.mrb[19].mxu0 }
 0x8c2   :  { %1877 = shalt.err (!%p1874_p4)
}
 0x8c3   :  { %s1878_s15 = scalar_lea.hbm %s2388_s3, 64 }
 0x8c4   :  { %p1879_p5 = scmp.ne.s32.totalorder %s2388_s3, %s1878_s15  ;;  %p1882_p6 = scmp.lt.u32.totalorder %s1878_s15, %s2388_s3 }
 0x8c6   :  { %p1884_p7 = pnand %p1882_p6, %p1879_p5 }
 0x8c8   :  { %1887 = shalt.err (!%p1884_p7)
}
 0x8c9   :  { %1237 = dma.vmem_to_hbm [thread:$0]  %s1235_s11, 64, %s2388_s3, [#allocation3]  }
 0x8ca   :  { %1888 = dma.done.wait [#allocation3], 64  }
 0x8cb   :  { %1889 = vsyncadd [#allocation3], 4294967232 }
 0x8cc   :  { %1241 = vsyncpa [#allocation3], 1 }

</bundles_post_ra>
